<compile_context>
chip_gen: v7x
topology: tpu7x:2x2x1
jax: 0.10.0
libtpu: 0.0.40
codegen_flags: <defaults>
</compile_context>

<pallas_src>
import jax
import jax.numpy as jnp
from jax import lax
from jax.experimental import pallas as pl
from jax.experimental.pallas import tpu as pltpu

N, L = 2, 16              # batch, sequence length (L must be a power of two)
NI, NF = 4, 8             # in-channels, per-branch out-channels (ni != nf -> bottleneck)
KS = (9, 5, 1)            # ks=10 -> [10, 5, 2] -> odd-ify -> [9, 5, 1]
PADMAX = max(k // 2 for k in KS)          # 4
NSHIFT = 2 * PADMAX + 1                   # 9 relative shifts (-4..4)
NL = N * L                                # batch folded into the lane (time) axis
MP_ROWS = 8                               # maxpool channel block, padded NI -> 8
KCOLS = NSHIFT * NF + MP_ROWS             # im2col height: 9*8 + 8 = 80
EPS = 1e-5

assert L & (L - 1) == 0, "L must be a power of two (mask math uses & (L-1))"


def inception_kernel(x_ref, wbt_ref, wcatt_ref, par_ref, out_ref):
    x = x_ref[...]                                    # (NI, NL)  channels x time

    # Packed per-channel vectors: cols 0..4 = gcat, ecat, gf, ef, bb.
    par = par_ref[...]                                # (4*NF, 8)
    gcat, ecat = par[:, 0:1], par[:, 1:2]
    gf, ef = par[:, 2:3], par[:, 3:4]
    bb = par[0:NF, 4:5]                               # (NF, 1)

    # Time position within each sequence: one lane iota, L is a power of two.
    t = lax.broadcasted_iota(jnp.int32, (1, NL), 1) & (L - 1)

    # --- bottleneck: 1x1 conv, no norm / no act ---
    xb = jnp.dot(wbt_ref[...], x, preferred_element_type=jnp.float32) + bb   # (NF, NL)

    # --- im2col: 9 lane-rolled, edge-masked copies of xb, stacked on sublanes.
    cols = []
    for d in range(-PADMAX, PADMAX + 1):
        if d == 0:
            cols.append(xb)
            continue
        r = pltpu.roll(xb, (-d) % NL, axis=1)         # r[:, p] = xb[:, p + d] (circular)
        valid = (t >= -d) if d < 0 else (t < L - d)   # (1, NL) lane mask, broadcast
        cols.append(jnp.where(valid, r, 0.0))

    # --- MaxPool1d(3, stride=1, padding=1) on the raw input (edge positions
    # clamp to x itself, equivalent to the implicit -inf padding). ---
    up = pltpu.roll(x, 1, axis=1)                     # up[:, p] = x[:, p-1]
    dn = pltpu.roll(x, NL - 1, axis=1)                # dn[:, p] = x[:, p+1]
    mp = jnp.maximum(jnp.maximum(x, jnp.where(t >= 1, up, x)),
                     jnp.where(t <= L - 2, dn, x))    # (NI, NL)
    cols.append(mp)
    cols.append(jnp.zeros((MP_ROWS - NI, NL), jnp.float32))   # pad block to 8 sublanes

    im2col = jnp.concatenate(cols, axis=0)            # (KCOLS, NL), 8-aligned blocks

    # --- single MXU matmul -> 4*NF-channel concat of all four branches.
    # Branch conv biases are omitted: a per-channel constant shift is a no-op
    # under the training-mode BatchNorms that immediately follow.
    pre = jnp.dot(wcatt_ref[...], im2col, preferred_element_type=jnp.float32)  # (4NF, NL)

    # --- fused BN+ReLU: per-branch BNs act on disjoint sublane rows, so one
    # pass covers all four branches, followed by the final Norm(4*nf)+ReLU.
    inv_m = 1.0 / NL

    def bn_relu(y, g, b):
        s1 = jnp.sum(y, axis=1, keepdims=True)
        s2 = jnp.sum(y * y, axis=1, keepdims=True)
        mean = s1 * inv_m
        var = jnp.maximum(s2 * inv_m - mean * mean, 0.0)
        return jnp.maximum((y - mean) * lax.rsqrt(var + EPS) * g + b, 0.0)

    y = bn_relu(pre, gcat, ecat)
    out_ref[...] = bn_relu(y, gf, ef)                 # one lane-dense store


def init_params(key):
    """Deterministic parameter init. Conv weights are stored pre-transposed:
    torch (Cout, Cin, k) -> here (k, Cin, Cout); biases/BN params as (1, C).
    BN affine params follow the module's Norm() init: weight=0.0, bias=0.001."""
    ks = jax.random.split(key, 10)
    p = {}
    p['wb'] = 0.1 * jax.random.normal(ks[0], (NI, NF), jnp.float32)
    p['bb'] = 0.1 * jax.random.normal(ks[1], (1, NF), jnp.float32)
    for i, k in enumerate(KS):
        p[f'w{i}'] = 0.1 * jax.random.normal(ks[2 + i], (k, NF, NF), jnp.float32)
        p[f'b{i}'] = 0.1 * jax.random.normal(jax.random.fold_in(ks[2 + i], 7),
                                             (1, NF), jnp.float32)
        p[f'g{i}'] = jnp.zeros((1, NF), jnp.float32)
        p[f'e{i}'] = jnp.full((1, NF), 0.001, jnp.float32)
    p['wmp'] = 0.1 * jax.random.normal(ks[5], (NI, NF), jnp.float32)
    p['bmp'] = 0.1 * jax.random.normal(ks[6], (1, NF), jnp.float32)
    p['gmp'] = jnp.zeros((1, NF), jnp.float32)
    p['emp'] = jnp.full((1, NF), 0.001, jnp.float32)
    p['gf'] = jnp.zeros((1, 4 * NF), jnp.float32)
    p['ef'] = jnp.full((1, 4 * NF), 0.001, jnp.float32)
    return p


@jax.jit
def inception_forward(x_ncl, params):
    # NCL -> (NI, N*L): channels-on-sublanes / time-on-lanes, batch folded into
    # the lane axis (wrapper-side XLA layout change).
    x_t = jnp.transpose(x_ncl.astype(jnp.float32), (1, 0, 2)).reshape(NI, NL)

    # Concatenated im2col weight, transposed to (4*NF, KCOLS).  Columns are
    # grouped by relative shift d (-4..4); a branch only occupies columns
    # inside its kernel window; the trailing MP_ROWS columns carry the MaxPool
    # branch's 1x1 conv (channel block padded NI -> 8 with zeros).
    wcat = jnp.zeros((KCOLS, 4 * NF), jnp.float32)
    wcat = wcat.at[0:9 * NF, 0:NF].set(params['w0'].reshape(9 * NF, NF))            # k=9
    wcat = wcat.at[2 * NF:7 * NF, NF:2 * NF].set(params['w1'].reshape(5 * NF, NF))  # k=5
    wcat = wcat.at[4 * NF:5 * NF, 2 * NF:3 * NF].set(params['w2'][0])               # k=1
    wcat = wcat.at[9 * NF:9 * NF + NI, 3 * NF:].set(params['wmp'])                  # maxpool 1x1
    wcat_t = wcat.T                                                                  # (4*NF, KCOLS)

    wb_t = params['wb'].T                                                            # (NF, NI)

    # Pack the small per-channel vectors into one input:
    #   col 0 gcat | 1 ecat | 2 gf | 3 ef | 4 bb (first NF rows) | 5..7 zero
    gcat = jnp.concatenate([params['g0'], params['g1'], params['g2'], params['gmp']], -1)
    ecat = jnp.concatenate([params['e0'], params['e1'], params['e2'], params['emp']], -1)
    par = jnp.zeros((4 * NF, 8), jnp.float32)
    par = par.at[:, 0].set(gcat[0])
    par = par.at[:, 1].set(ecat[0])
    par = par.at[:, 2].set(params['gf'][0])
    par = par.at[:, 3].set(params['ef'][0])
    par = par.at[0:NF, 4].set(params['bb'][0])

    vmem = pl.BlockSpec(memory_space=pltpu.MemorySpace.VMEM)
    out_t = pl.pallas_call(
        inception_kernel,
        out_shape=jax.ShapeDtypeStruct((4 * NF, NL), jnp.float32),
        in_specs=[vmem] * 4,
        out_specs=vmem,
    )(x_t, wb_t, wcat_t, par)

    return jnp.transpose(out_t.reshape(4 * NF, N, L), (1, 0, 2))   # -> NCL


def reference_forward(x_ncl, p):
    """Pure-JAX reference mirroring the PyTorch forward (training-mode BN)."""
    x = jnp.transpose(x_ncl, (0, 2, 1)).astype(jnp.float32)        # (N, L, NI)

    def bn_relu(y, g, b):
        m = jnp.mean(y, axis=(0, 1), keepdims=True)
        v = jnp.mean((y - m) ** 2, axis=(0, 1), keepdims=True)
        return jnp.maximum((y - m) * lax.rsqrt(v + EPS) * g.reshape(1, 1, -1)
                           + b.reshape(1, 1, -1), 0.0)

    xb = jnp.einsum('nlc,cf->nlf', x, p['wb']) + p['bb'][None]
    branches = []
    for i, k in enumerate(KS):
        pad = k // 2
        xp = jnp.pad(xb, ((0, 0), (pad, pad), (0, 0)))
        acc = sum(jnp.einsum('nlc,cf->nlf', xp[:, j:j + L, :], p[f'w{i}'][j])
                  for j in range(k)) + p[f'b{i}'][None]
        branches.append(bn_relu(acc, p[f'g{i}'], p[f'e{i}']))
    # MaxPool1d(3,1,1): implicit -inf padding == ignore missing edge neighbors.
    left = jnp.concatenate([x[:, :1], x[:, :-1]], axis=1)
    right = jnp.concatenate([x[:, 1:], x[:, -1:]], axis=1)
    mp = jnp.maximum(jnp.maximum(x, left), right)
    accm = jnp.einsum('nlc,cf->nlf', mp, p['wmp']) + p['bmp'][None]
    branches.append(bn_relu(accm, p['gmp'], p['emp']))
    cat = jnp.concatenate(branches, axis=-1)
    out = bn_relu(cat, p['gf'], p['ef'])
    return jnp.transpose(out, (0, 2, 1))


if __name__ == "__main__":
    key = jax.random.PRNGKey(0)
    kx, kp = jax.random.split(key)
    x = jax.random.normal(kx, (N, NI, L), jnp.float32)   # NCL, like PyTorch Conv1d input
    params = init_params(kp)

    # 1) module-faithful init (Norm(): weight=0, bias=0.001)
    out = jax.block_until_ready(inception_forward(x, params))
    ref = reference_forward(x, params)
    assert out.shape == (N, 4 * NF, L), out.shape
    assert jnp.allclose(out, ref, atol=1e-5, rtol=1e-5), \
        float(jnp.max(jnp.abs(out - ref)))

    # 2) randomized BN affine params so the check exercises the full BN/conv math
    #    (the faithful gamma=0 init makes the output a constant).
    kr = jax.random.split(jax.random.PRNGKey(1), 10)
    p2 = dict(params)
    for j, gname in enumerate(['g0', 'g1', 'g2', 'gmp', 'gf']):
        c = p2[gname].shape[-1]
        p2[gname] = jax.random.normal(kr[2 * j], (1, c), jnp.float32)
        p2['e' + gname[1:]] = 0.1 * jax.random.normal(kr[2 * j + 1], (1, c), jnp.float32)
    out2 = jax.block_until_ready(inception_forward(x, p2))
    ref2 = reference_forward(x, p2)
    assert jnp.allclose(out2, ref2, atol=1e-5, rtol=1e-5), \
        float(jnp.max(jnp.abs(out2 - ref2)))

    print("KERNEL_OK")
</pallas_src>

<mosaic_0001>
module attributes {stable_mosaic.version = 11 : i64} {
  func.func @inception_kernel(%arg0: memref<4x32xf32, #tpu.memory_space<vmem>>, %arg1: memref<8x4xf32, #tpu.memory_space<vmem>>, %arg2: memref<32x80xf32, #tpu.memory_space<vmem>>, %arg3: memref<32x8xf32, #tpu.memory_space<vmem>>, %arg4: memref<32x32xf32, #tpu.memory_space<vmem>>) attributes {dimension_semantics = [], scalar_prefetch = 0 : i64, scratch_operands = 0 : i64, tpu.core_type = #tpu.core_type<tc>} {
    %c0 = arith.constant 0 : index
    %c0_0 = arith.constant 0 : index
    %0 = vector.load %arg0[%c0, %c0_0] : memref<4x32xf32, #tpu.memory_space<vmem>>, vector<4x32xf32>
    %c0_1 = arith.constant 0 : index
    %c0_2 = arith.constant 0 : index
    %1 = vector.load %arg3[%c0_1, %c0_2] : memref<32x8xf32, #tpu.memory_space<vmem>>, vector<32x8xf32>
    %2 = vector.extract_strided_slice %1 {offsets = [0, 0], sizes = [32, 1], strides = [1, 1]} : vector<32x8xf32> to vector<32x1xf32>
    %3 = vector.extract_strided_slice %1 {offsets = [0, 1], sizes = [32, 1], strides = [1, 1]} : vector<32x8xf32> to vector<32x1xf32>
    %4 = vector.extract_strided_slice %1 {offsets = [0, 2], sizes = [32, 1], strides = [1, 1]} : vector<32x8xf32> to vector<32x1xf32>
    %5 = vector.extract_strided_slice %1 {offsets = [0, 3], sizes = [32, 1], strides = [1, 1]} : vector<32x8xf32> to vector<32x1xf32>
    %6 = vector.extract_strided_slice %1 {offsets = [0, 4], sizes = [8, 1], strides = [1, 1]} : vector<32x8xf32> to vector<8x1xf32>
    %7 = tpu.iota {dimensions = array<i32: 1>} : vector<1x32xi32>
    %c15_i32 = arith.constant 15 : i32
    %8 = vector.broadcast %c15_i32 : i32 to vector<1x32xi32>
    %9 = arith.andi %7, %8 : vector<1x32xi32>
    %c0_3 = arith.constant 0 : index
    %c0_4 = arith.constant 0 : index
    %10 = vector.load %arg1[%c0_3, %c0_4] : memref<8x4xf32, #tpu.memory_space<vmem>>, vector<8x4xf32>
    %cst = arith.constant dense<0.000000e+00> : vector<8x32xf32>
    %11 = tpu.matmul %10, %0, %cst {dimension_numbers = #tpu.dot_dimension_numbers<[1], [0], [0], [1], [0, 0, 1, 1], [], []>} : vector<8x4xf32>, vector<4x32xf32>, vector<8x32xf32> -> vector<8x32xf32>
    %12 = vector.broadcast %6 : vector<8x1xf32> to vector<8x32xf32>
    %13 = arith.addf %11, %12 : vector<8x32xf32>
    %c4_i32 = arith.constant 4 : i32
    %14 = tpu.dynamic_rotate %13 by %c4_i32 dim 1 : vector<8x32xf32>, i32 -> vector<8x32xf32>
    %c4_i32_5 = arith.constant 4 : i32
    %15 = vector.broadcast %c4_i32_5 : i32 to vector<1x32xi32>
    %16 = arith.cmpi sge, %9, %15 : vector<1x32xi32>
    %cst_6 = arith.constant 0.000000e+00 : f32
    %17 = vector.shape_cast %16 : vector<1x32xi1> to vector<1x32xi1>
    %18 = vector.broadcast %17 : vector<1x32xi1> to vector<8x32xi1>
    %19 = vector.broadcast %cst_6 : f32 to vector<8x32xf32>
    %20 = arith.select %18, %14, %19 : vector<8x32xi1>, vector<8x32xf32>
    %c3_i32 = arith.constant 3 : i32
    %21 = tpu.dynamic_rotate %13 by %c3_i32 dim 1 : vector<8x32xf32>, i32 -> vector<8x32xf32>
    %c3_i32_7 = arith.constant 3 : i32
    %22 = vector.broadcast %c3_i32_7 : i32 to vector<1x32xi32>
    %23 = arith.cmpi sge, %9, %22 : vector<1x32xi32>
    %cst_8 = arith.constant 0.000000e+00 : f32
    %24 = vector.shape_cast %23 : vector<1x32xi1> to vector<1x32xi1>
    %25 = vector.broadcast %24 : vector<1x32xi1> to vector<8x32xi1>
    %26 = vector.broadcast %cst_8 : f32 to vector<8x32xf32>
    %27 = arith.select %25, %21, %26 : vector<8x32xi1>, vector<8x32xf32>
    %c2_i32 = arith.constant 2 : i32
    %28 = tpu.dynamic_rotate %13 by %c2_i32 dim 1 : vector<8x32xf32>, i32 -> vector<8x32xf32>
    %c2_i32_9 = arith.constant 2 : i32
    %29 = vector.broadcast %c2_i32_9 : i32 to vector<1x32xi32>
    %30 = arith.cmpi sge, %9, %29 : vector<1x32xi32>
    %cst_10 = arith.constant 0.000000e+00 : f32
    %31 = vector.shape_cast %30 : vector<1x32xi1> to vector<1x32xi1>
    %32 = vector.broadcast %31 : vector<1x32xi1> to vector<8x32xi1>
    %33 = vector.broadcast %cst_10 : f32 to vector<8x32xf32>
    %34 = arith.select %32, %28, %33 : vector<8x32xi1>, vector<8x32xf32>
    %c1_i32 = arith.constant 1 : i32
    %35 = tpu.dynamic_rotate %13 by %c1_i32 dim 1 : vector<8x32xf32>, i32 -> vector<8x32xf32>
    %c1_i32_11 = arith.constant 1 : i32
    %36 = vector.broadcast %c1_i32_11 : i32 to vector<1x32xi32>
    %37 = arith.cmpi sge, %9, %36 : vector<1x32xi32>
    %cst_12 = arith.constant 0.000000e+00 : f32
    %38 = vector.shape_cast %37 : vector<1x32xi1> to vector<1x32xi1>
    %39 = vector.broadcast %38 : vector<1x32xi1> to vector<8x32xi1>
    %40 = vector.broadcast %cst_12 : f32 to vector<8x32xf32>
    %41 = arith.select %39, %35, %40 : vector<8x32xi1>, vector<8x32xf32>
    %c31_i32 = arith.constant 31 : i32
    %42 = tpu.dynamic_rotate %13 by %c31_i32 dim 1 : vector<8x32xf32>, i32 -> vector<8x32xf32>
    %c15_i32_13 = arith.constant 15 : i32
    %43 = vector.broadcast %c15_i32_13 : i32 to vector<1x32xi32>
    %44 = arith.cmpi slt, %9, %43 : vector<1x32xi32>
    %cst_14 = arith.constant 0.000000e+00 : f32
    %45 = vector.shape_cast %44 : vector<1x32xi1> to vector<1x32xi1>
    %46 = vector.broadcast %45 : vector<1x32xi1> to vector<8x32xi1>
    %47 = vector.broadcast %cst_14 : f32 to vector<8x32xf32>
    %48 = arith.select %46, %42, %47 : vector<8x32xi1>, vector<8x32xf32>
    %c30_i32 = arith.constant 30 : i32
    %49 = tpu.dynamic_rotate %13 by %c30_i32 dim 1 : vector<8x32xf32>, i32 -> vector<8x32xf32>
    %c14_i32 = arith.constant 14 : i32
    %50 = vector.broadcast %c14_i32 : i32 to vector<1x32xi32>
    %51 = arith.cmpi slt, %9, %50 : vector<1x32xi32>
    %cst_15 = arith.constant 0.000000e+00 : f32
    %52 = vector.shape_cast %51 : vector<1x32xi1> to vector<1x32xi1>
    %53 = vector.broadcast %52 : vector<1x32xi1> to vector<8x32xi1>
    %54 = vector.broadcast %cst_15 : f32 to vector<8x32xf32>
    %55 = arith.select %53, %49, %54 : vector<8x32xi1>, vector<8x32xf32>
    %c29_i32 = arith.constant 29 : i32
    %56 = tpu.dynamic_rotate %13 by %c29_i32 dim 1 : vector<8x32xf32>, i32 -> vector<8x32xf32>
    %c13_i32 = arith.constant 13 : i32
    %57 = vector.broadcast %c13_i32 : i32 to vector<1x32xi32>
    %58 = arith.cmpi slt, %9, %57 : vector<1x32xi32>
    %cst_16 = arith.constant 0.000000e+00 : f32
    %59 = vector.shape_cast %58 : vector<1x32xi1> to vector<1x32xi1>
    %60 = vector.broadcast %59 : vector<1x32xi1> to vector<8x32xi1>
    %61 = vector.broadcast %cst_16 : f32 to vector<8x32xf32>
    %62 = arith.select %60, %56, %61 : vector<8x32xi1>, vector<8x32xf32>
    %c28_i32 = arith.constant 28 : i32
    %63 = tpu.dynamic_rotate %13 by %c28_i32 dim 1 : vector<8x32xf32>, i32 -> vector<8x32xf32>
    %c12_i32 = arith.constant 12 : i32
    %64 = vector.broadcast %c12_i32 : i32 to vector<1x32xi32>
    %65 = arith.cmpi slt, %9, %64 : vector<1x32xi32>
    %cst_17 = arith.constant 0.000000e+00 : f32
    %66 = vector.shape_cast %65 : vector<1x32xi1> to vector<1x32xi1>
    %67 = vector.broadcast %66 : vector<1x32xi1> to vector<8x32xi1>
    %68 = vector.broadcast %cst_17 : f32 to vector<8x32xf32>
    %69 = arith.select %67, %63, %68 : vector<8x32xi1>, vector<8x32xf32>
    %c1_i32_18 = arith.constant 1 : i32
    %70 = tpu.dynamic_rotate %0 by %c1_i32_18 dim 1 : vector<4x32xf32>, i32 -> vector<4x32xf32>
    %c31_i32_19 = arith.constant 31 : i32
    %71 = tpu.dynamic_rotate %0 by %c31_i32_19 dim 1 : vector<4x32xf32>, i32 -> vector<4x32xf32>
    %c1_i32_20 = arith.constant 1 : i32
    %72 = vector.broadcast %c1_i32_20 : i32 to vector<1x32xi32>
    %73 = arith.cmpi sge, %9, %72 : vector<1x32xi32>
    %74 = vector.shape_cast %73 : vector<1x32xi1> to vector<1x32xi1>
    %75 = vector.broadcast %74 : vector<1x32xi1> to vector<4x32xi1>
    %76 = arith.select %75, %70, %0 : vector<4x32xi1>, vector<4x32xf32>
    %77 = arith.maximumf %0, %76 : vector<4x32xf32>
    %c14_i32_21 = arith.constant 14 : i32
    %78 = vector.broadcast %c14_i32_21 : i32 to vector<1x32xi32>
    %79 = arith.cmpi sle, %9, %78 : vector<1x32xi32>
    %80 = vector.shape_cast %79 : vector<1x32xi1> to vector<1x32xi1>
    %81 = vector.broadcast %80 : vector<1x32xi1> to vector<4x32xi1>
    %82 = arith.select %81, %71, %0 : vector<4x32xi1>, vector<4x32xf32>
    %83 = arith.maximumf %77, %82 : vector<4x32xf32>
    %cst_22 = arith.constant 0.000000e+00 : f32
    %84 = vector.broadcast %cst_22 : f32 to vector<4x32xf32>
    %85 = tpu.concatenate %20, %27, %34, %41, %13, %48, %55, %62, %69, %83, %84 in 0 : vector<8x32xf32>, vector<8x32xf32>, vector<8x32xf32>, vector<8x32xf32>, vector<8x32xf32>, vector<8x32xf32>, vector<8x32xf32>, vector<8x32xf32>, vector<8x32xf32>, vector<4x32xf32>, vector<4x32xf32> -> vector<80x32xf32>
    %c0_23 = arith.constant 0 : index
    %c0_24 = arith.constant 0 : index
    %86 = vector.load %arg2[%c0_23, %c0_24] : memref<32x80xf32, #tpu.memory_space<vmem>>, vector<32x80xf32>
    %cst_25 = arith.constant dense<0.000000e+00> : vector<32x32xf32>
    %87 = tpu.matmul %86, %85, %cst_25 {dimension_numbers = #tpu.dot_dimension_numbers<[1], [0], [0], [1], [0, 0, 1, 1], [], []>} : vector<32x80xf32>, vector<80x32xf32>, vector<32x32xf32> -> vector<32x32xf32>
    %cst_26 = arith.constant dense<0.000000e+00> : vector<32xf32>
    %88 = vector.multi_reduction <add>, %87, %cst_26 [1] : vector<32x32xf32> to vector<32xf32>
    %89 = vector.shape_cast %88 : vector<32xf32> to vector<32x1xf32>
    %90 = arith.mulf %87, %87 : vector<32x32xf32>
    %cst_27 = arith.constant dense<0.000000e+00> : vector<32xf32>
    %91 = vector.multi_reduction <add>, %90, %cst_27 [1] : vector<32x32xf32> to vector<32xf32>
    %92 = vector.shape_cast %91 : vector<32xf32> to vector<32x1xf32>
    %cst_28 = arith.constant 3.125000e-02 : f32
    %93 = vector.broadcast %cst_28 : f32 to vector<32x1xf32>
    %94 = arith.mulf %89, %93 : vector<32x1xf32>
    %cst_29 = arith.constant 3.125000e-02 : f32
    %95 = vector.broadcast %cst_29 : f32 to vector<32x1xf32>
    %96 = arith.mulf %92, %95 : vector<32x1xf32>
    %97 = arith.mulf %94, %94 : vector<32x1xf32>
    %98 = arith.subf %96, %97 : vector<32x1xf32>
    %cst_30 = arith.constant 0.000000e+00 : f32
    %99 = vector.broadcast %cst_30 : f32 to vector<32x1xf32>
    %100 = arith.maximumf %98, %99 : vector<32x1xf32>
    %101 = vector.broadcast %94 : vector<32x1xf32> to vector<32x32xf32>
    %102 = arith.subf %87, %101 : vector<32x32xf32>
    %cst_31 = arith.constant 9.99999974E-6 : f32
    %103 = vector.broadcast %cst_31 : f32 to vector<32x1xf32>
    %104 = arith.addf %100, %103 : vector<32x1xf32>
    %105 = math.rsqrt %104 : vector<32x1xf32>
    %106 = vector.broadcast %105 : vector<32x1xf32> to vector<32x32xf32>
    %107 = arith.mulf %102, %106 : vector<32x32xf32>
    %108 = vector.broadcast %2 : vector<32x1xf32> to vector<32x32xf32>
    %109 = arith.mulf %107, %108 : vector<32x32xf32>
    %110 = vector.broadcast %3 : vector<32x1xf32> to vector<32x32xf32>
    %111 = arith.addf %109, %110 : vector<32x32xf32>
    %cst_32 = arith.constant 0.000000e+00 : f32
    %112 = vector.broadcast %cst_32 : f32 to vector<32x32xf32>
    %113 = arith.maximumf %111, %112 : vector<32x32xf32>
    %cst_33 = arith.constant dense<0.000000e+00> : vector<32xf32>
    %114 = vector.multi_reduction <add>, %113, %cst_33 [1] : vector<32x32xf32> to vector<32xf32>
    %115 = vector.shape_cast %114 : vector<32xf32> to vector<32x1xf32>
    %116 = arith.mulf %113, %113 : vector<32x32xf32>
    %cst_34 = arith.constant dense<0.000000e+00> : vector<32xf32>
    %117 = vector.multi_reduction <add>, %116, %cst_34 [1] : vector<32x32xf32> to vector<32xf32>
    %118 = vector.shape_cast %117 : vector<32xf32> to vector<32x1xf32>
    %cst_35 = arith.constant 3.125000e-02 : f32
    %119 = vector.broadcast %cst_35 : f32 to vector<32x1xf32>
    %120 = arith.mulf %115, %119 : vector<32x1xf32>
    %cst_36 = arith.constant 3.125000e-02 : f32
    %121 = vector.broadcast %cst_36 : f32 to vector<32x1xf32>
    %122 = arith.mulf %118, %121 : vector<32x1xf32>
    %123 = arith.mulf %120, %120 : vector<32x1xf32>
    %124 = arith.subf %122, %123 : vector<32x1xf32>
    %cst_37 = arith.constant 0.000000e+00 : f32
    %125 = vector.broadcast %cst_37 : f32 to vector<32x1xf32>
    %126 = arith.maximumf %124, %125 : vector<32x1xf32>
    %127 = vector.broadcast %120 : vector<32x1xf32> to vector<32x32xf32>
    %128 = arith.subf %113, %127 : vector<32x32xf32>
    %cst_38 = arith.constant 9.99999974E-6 : f32
    %129 = vector.broadcast %cst_38 : f32 to vector<32x1xf32>
    %130 = arith.addf %126, %129 : vector<32x1xf32>
    %131 = math.rsqrt %130 : vector<32x1xf32>
    %132 = vector.broadcast %131 : vector<32x1xf32> to vector<32x32xf32>
    %133 = arith.mulf %128, %132 : vector<32x32xf32>
    %134 = vector.broadcast %4 : vector<32x1xf32> to vector<32x32xf32>
    %135 = arith.mulf %133, %134 : vector<32x32xf32>
    %136 = vector.broadcast %5 : vector<32x1xf32> to vector<32x32xf32>
    %137 = arith.addf %135, %136 : vector<32x32xf32>
    %cst_39 = arith.constant 0.000000e+00 : f32
    %138 = vector.broadcast %cst_39 : f32 to vector<32x32xf32>
    %139 = arith.maximumf %137, %138 : vector<32x32xf32>
    %c0_40 = arith.constant 0 : index
    %c0_41 = arith.constant 0 : index
    %140 = vector.load %arg4[%c0_40, %c0_41] : memref<32x32xf32, #tpu.memory_space<vmem>>, vector<32x32xf32>
    tpu.vector_store %arg4[%c0_40, %c0_41], %139 {strides = array<i32>} : memref<32x32xf32, #tpu.memory_space<vmem>>, vector<32x32xf32>,
    return
  }
}

</mosaic_0001>

<bundles_post_ra>
// kernel: inception_forward.1
= control target key start
LH: loop header
LB: loop body
LE: loop exit
PB: predicated region body
PF: predicated region fallthrough
CT: control target
= control target key end

     0   :  { %vm35_vm0 = vcmask 1043456   ;;  %v667_v0 = vmov 0.0   ;;  %vm668_vm1 = vmmov 0   ;;  %vm31_vm2 = vcmask 31744   ;;  %s672_s21 = smov 100   ;;  %s673_s22 = smov 97   ;;  %s871_s0 = inlined_call_operand.vmem [shape: f32[4,32], index: 0, kind: input, shape index: {}]   ;;  %s872_s1 = inlined_call_operand.vmem [shape: f32[8,4], index: 1, kind: input, shape index: {}]   ;;  %s873_s3 = inlined_call_operand.vmem [shape: f32[32,8], index: 3, kind: input, shape index: {}]   ;;  %s874_s2 = inlined_call_operand.vmem [shape: f32[32,80], index: 2, kind: input, shape index: {}]   ;;  %s875_s4 = inlined_call_operand.vmem [shape: f32[32,32], index: 4, kind: output, shape index: {}]  }
   0x1   :  { %555 = vmatprep.subr.mxu0 %v667_v0  ;;  %v712_v1 = vld [vmem:[%s871_s0] sm:$0xf]  ;;  %557 = vmatprep.mubr.msk.f32.mxu0 %vm668_vm1, %v667_v0  ;;  %v669_v4 = vmov 4   ;;  %s670_s0 = smov 32   ;;  %vm109_vm3 = vcmask 1047808   ;;  %s674_s23 = smov 98   ;;  %v22_v19 = vlaneseq }
   0x2   :  { %v25_v2 = vld [vmem:[%s872_s1] sm:$0xff]  ;;  %556 = vmatpush3.msk.msra.mxu0 %vm35_vm0, %v712_v1  ;;  %643 = vset.pattern.permute.xlu0 %v669_v4  ;;  %s671_s1 = smov 99   ;;  %s675_s24 = smov 127   ;;  %vm198_vm4 = vcmask 654336   ;;  %v196_v18 = vld [vmem:[%s874_s2 + $0x10] sm:$0xff]  ;;  %vm679_vm12 = vmmov 1  }
   0x3   :  { %v720_v3 = vld [vmem:[%s873_s3] sm:$0xff]  ;;  %558 = vmatmul.mubr.msk.f32.vlgmr.msra.gmra.mrb[0].mxu0 %vm31_vm2, %v25_v2  ;;  %173 = vrot.lane.b32.xlu1 %v712_v1, %s670_s0  ;;  %s676_s29 = smov 126   ;;  %s677_s30 = smov 125   ;;  %v23_v20 = vand.u32 127, %v22_v19  ;;  %v195_v41 = vld [vmem:[%s874_s2 + $0x8] sm:$0xff]  ;;  %v197_v42 = vld [vmem:[%s874_s2 + $0x18] sm:$0xff] }
   0x4   :  { %28 = vperm.xlu0 %643, %v720_v3   ;;  %v194_v17 = vld [vmem:[%s874_s2] sm:$0xff]  ;;  %583 = vmatprep.mubr.msk.f32.mxu1 %vm198_vm4, %v196_v18  ;;  %s678_s5 = smov 124   ;;  %v680_v43 = vmov 0   ;;  %v791_v60 = vld [vmem:[%s873_s3 + $0x8] sm:$0xff]  ;;  %v797_v61 = vld [vmem:[%s873_s3 + $0x10] sm:$0xff]  ;;  %v681_v63 = vmov 1  }
   0x5   :  { %580 = vmatprep.mubr.msk.f32.mxu0 %vm198_vm4, %v194_v17  ;;  %v24_v21 = vand.u32 15, %v23_v20  ;;  %645 = vset.pattern.permute.xlu1 %v680_v43  ;;  %v803_v62 = vld [vmem:[%s873_s3 + $0x18] sm:$0xff]  ;;  %v682_v0 = vmov 2  }
   0x7   :  { %vm116_vm5 = vcmp.ge.s32.totalorder %v24_v21, 4  ;;  %vm124_vm6 = vcmp.ge.s32.totalorder %v24_v21, 3  ;;  %vm131_vm8 = vcmp.ge.s32.totalorder %v24_v21, 2  ;;  %vm138_vm9 = vcmp.ge.s32.totalorder %v24_v21, 1 }
   0x8   :  { %vm587_vm7 = vmpackc.low %vm124_vm6, %vm116_vm5  ;;  %vm145_vm11 = vcmp.lt.s32.totalorder %v24_v21, 15  ;;  %vm152_vm14 = vcmp.lt.s32.totalorder %v24_v21, 14  ;;  %vm159_vm15 = vcmp.lt.s32.totalorder %v24_v21, 13  ;;  %vm185_vm2 = vcmp.le.s32.totalorder %v24_v21, 14  ;;  %644 = vset.pattern.permute.xlu0 %v680_v43 }
   0x9   :  { %vm593_vm10 = vmpackc.low %vm138_vm9, %vm131_vm8 }
   0xa   :  { %vm599_vm13 = vmpackc.low %vm145_vm11, %vm679_vm12 }
   0xb   :  { %vm605_vm1 = vmpackc.low %vm159_vm15, %vm152_vm14 }
  0x75   :  { %v174_v9 = vpop.permute.xlu1 %173 }
  0x76   :  { %v175_v10 = vsel %vm109_vm3, %v174_v9, %v712_v1 }
  0x83   :  { %v29_v5 = vpop.permute.xlu0 %28 }
  0xd6   :  { %v105_v6 = vpop.f32.mrb[0].mxu0 }
  0xd7   :  { %v726_v7 = vadd.f32 %v105_v6, %v29_v5  ;;  %v559_v8 = vpop.f32.mrb[1].mxu0 }
  0xd9   :  { %110 = vrot.lane.b32.xlu0 %v726_v7, %s670_s0 }
  0xdd   :  { %176 = vrot.lane.b32.xlu0 %v175_v10, %s670_s0 }
 0x14b   :  { %v111_v11 = vpop.permute.xlu0 %110 }
 0x14c   :  { %v112_v12 = vsel %vm109_vm3, %v111_v11, %v726_v7 }
 0x14d   :  { %113 = vrot.lane.b32.xlu1 %v112_v12, %s670_s0 }
 0x14f   :  { %v177_v15 = vpop.permute.xlu0 %176 }
 0x150   :  { %v178_v16 = vsel %vm109_vm3, %v177_v15, %v712_v1 }
 0x1bf   :  { %v114_v13 = vpop.permute.xlu1 %113 }
 0x1c0   :  { %v115_v14 = vsel %vm109_vm3, %v114_v13, %v726_v7  ;;  %vm166_vm3 = vcmp.lt.s32.totalorder %v24_v21, 12 }
 0x1c1   :  { %127 = vrot.lane.b32.xlu0 %v115_v14, %s671_s1  ;;  %120 = vrot.lane.b32.xlu1 %v115_v14, %s672_s21  ;;  %vm611_vm5 = vmpackc.low %vm35_vm0, %vm166_vm3  ;;  %vm296_vm0 = vcmask 261120  }
 0x1c5   :  { %141 = vrot.lane.b32.xlu0 %v115_v14, %s673_s22  ;;  %134 = vrot.lane.b32.xlu1 %v115_v14, %s674_s23 }
 0x1c9   :  { %148 = vrot.lane.b32.xlu1 %v115_v14, %s675_s24  ;;  %180 = vrot.lane.b32.xlu0 %v178_v16, %s673_s22 }
 0x1cd   :  { %155 = vrot.lane.b32.xlu1 %v115_v14, %s676_s29  ;;  %162 = vrot.lane.b32.xlu0 %v115_v14, %s677_s30 }
 0x1d1   :  { %188 = vrot.lane.b32.xlu1 %v178_v16, %s675_s24  ;;  %169 = vrot.lane.b32.xlu0 %v115_v14, %s678_s5 }
 0x233   :  { %v121_v22 = vpop.permute.xlu1 %120  ;;  %v128_v23 = vpop.permute.xlu0 %127 }
 0x234   :  { %v586_v24 = vpack.c.bf16 %v128_v23, %v121_v22 }
 0x236   :  { %588 = vmatprep.subr.msk.bf16.mxu0 %vm587_vm7, %v586_v24  ;;  %616 = vmatprep.subr.msk.bf16.mxu1 %vm587_vm7, %v586_v24 }
 0x237   :  { %v135_v25 = vpop.permute.xlu1 %134  ;;  %591 = vmatpush3.bf16.msk.msra.mxu0 %vm587_vm7, %v586_v24  ;;  %621 = vmatpush3.bf16.msk.msra.mxu1 %vm587_vm7, %v586_v24  ;;  %v142_v26 = vpop.permute.xlu0 %141 }
 0x238   :  { %v592_v27 = vpack.c.bf16 %v142_v26, %v135_v25 }
 0x23a   :  { %594 = vmatprep.subr.msk.bf16.mxu0 %vm593_vm10, %v592_v27  ;;  %617 = vmatprep.subr.msk.bf16.mxu1 %vm593_vm10, %v592_v27 }
 0x23b   :  { %v149_v28 = vpop.permute.xlu1 %148  ;;  %597 = vmatpush3.bf16.msk.msra.mxu0 %vm593_vm10, %v592_v27  ;;  %622 = vmatpush3.bf16.msk.msra.mxu1 %vm593_vm10, %v592_v27  ;;  %v181_v29 = vpop.permute.xlu0 %180 }
 0x23c   :  { %v598_v30 = vpack.c.bf16 %v149_v28, %v726_v7  ;;  %v183_v33 = vsel %vm138_vm9, %v181_v29, %v712_v1 }
 0x23d   :  { %v184_v35 = vmax.f32 %v712_v1, %v183_v33 }
 0x23e   :  { %600 = vmatprep.subr.msk.bf16.mxu0 %vm599_vm13, %v598_v30  ;;  %618 = vmatprep.subr.msk.bf16.mxu1 %vm599_vm13, %v598_v30 }
 0x23f   :  { %v156_v31 = vpop.permute.xlu1 %155  ;;  %603 = vmatpush3.bf16.msk.msra.mxu0 %vm599_vm13, %v598_v30  ;;  %623 = vmatpush3.bf16.msk.msra.mxu1 %vm599_vm13, %v598_v30  ;;  %v163_v32 = vpop.permute.xlu0 %162 }
 0x240   :  { %v604_v34 = vpack.c.bf16 %v163_v32, %v156_v31 }
 0x242   :  { %606 = vmatprep.subr.msk.bf16.mxu0 %vm605_vm1, %v604_v34  ;;  %619 = vmatprep.subr.msk.bf16.mxu1 %vm605_vm1, %v604_v34 }
 0x243   :  { %v189_v36 = vpop.permute.xlu1 %188  ;;  %609 = vmatpush3.bf16.msk.msra.mxu0 %vm605_vm1, %v604_v34  ;;  %624 = vmatpush3.bf16.msk.msra.mxu1 %vm605_vm1, %v604_v34  ;;  %v170_v39 = vpop.permute.xlu0 %169 }
 0x244   :  { %v191_v37 = vsel %vm185_vm2, %v189_v36, %v712_v1 }
 0x245   :  { %v192_v38 = vmax.f32 %v184_v35, %v191_v37 }
 0x247   :  { %v610_v40 = vpack.c.bf16 %v192_v38, %v170_v39 }
 0x249   :  { %612 = vmatprep.subr.msk.bf16.mxu0 %vm611_vm5, %v610_v40  ;;  %620 = vmatprep.subr.msk.bf16.mxu1 %vm611_vm5, %v610_v40 }
 0x24a   :  { %615 = vmatpush3.bf16.msk.msra.mxu0 %vm611_vm5, %v610_v40  ;;  %625 = vmatpush3.bf16.msk.msra.mxu1 %vm611_vm5, %v610_v40 }
 0x24d   :  { %581 = vmatmul.mubr.msk.f32.vlgmr.msra.gmra.mrb[2].mxu0 %vm198_vm4, %v195_v41  ;;  %584 = vmatmul.mubr.msk.f32.vlgmr.msra.gmra.mrb[0].mxu1 %vm198_vm4, %v197_v42 }
 0x320   :  { %v760_v44 = vpop.f32.mrb[2].mxu0  ;;  %v762_v45 = vpop.f32.mrb[0].mxu1 }
 0x321   :  { %v764_v46 = vpop.f32.mrb[1].mxu1  ;;  %v306_v47 = vsel %vm296_vm0, %v762_v45, 0.0  ;;  %v300_v48 = vsel %vm296_vm0, %v760_v44, 0.0  ;;  %v770_v49 = vpop.f32.mrb[3].mxu0  ;;  %v310_v53 = vmul.f32 %v760_v44, %v760_v44  ;;  %v312_v57 = vmul.f32 %v762_v45, %v762_v45 }
 0x322   :  { %307 = vadd.xlane.f32.xlu1 %v306_v47  ;;  %301 = vadd.xlane.f32.xlu0 %v300_v48  ;;  %v297_v50 = vsel %vm296_vm0, %v770_v49, 0.0  ;;  %v309_v51 = vmul.f32 %v770_v49, %v770_v49  ;;  %v303_v52 = vsel %vm296_vm0, %v764_v46, 0.0  ;;  %v311_v54 = vmul.f32 %v764_v46, %v764_v46 }
 0x323   :  { %v316_v56 = vsel %vm296_vm0, %v310_v53, 0.0  ;;  %v322_v59 = vsel %vm296_vm0, %v312_v57, 0.0 }
 0x324   :  { %v313_v55 = vsel %vm296_vm0, %v309_v51, 0.0  ;;  %v319_v58 = vsel %vm296_vm0, %v311_v54, 0.0 }
 0x326   :  { %304 = vadd.xlane.f32.xlu0 %v303_v52  ;;  %298 = vadd.xlane.f32.xlu1 %v297_v50 }
 0x32a   :  { %314 = vadd.xlane.f32.xlu0 %v313_v55  ;;  %317 = vadd.xlane.f32.xlu1 %v316_v56 }
 0x32e   :  { %320 = vadd.xlane.f32.xlu0 %v319_v58  ;;  %323 = vadd.xlane.f32.xlu1 %v322_v59 }
 0x33f   :  { %367 = vperm.xlu1 %645, %v791_v60  }
 0x343   :  { %372 = vperm.xlu1 %645, %v797_v61  }
 0x344   :  { %362 = vperm.xlu0 %644, %v720_v3  }
 0x347   :  { %377 = vperm.xlu1 %645, %v803_v62  }
 0x348   :  { %647 = vset.pattern.permute.xlu0 %v682_v0 }
 0x34b   :  { %646 = vset.pattern.permute.xlu1 %v681_v63 }
 0x34c   :  { %385 = vperm.xlu1 %646, %v720_v3  }
 0x350   :  { %389 = vperm.xlu1 %646, %v791_v60  }
 0x354   :  { %393 = vperm.xlu1 %646, %v797_v61  }
 0x358   :  { %397 = vperm.xlu1 %646, %v803_v62  }
 0x35c   :  { %648 = vset.pattern.permute.xlu1 %v682_v0 }
 0x3af   :  { %v308_v1 = vpop.xlane.xlu1 %307  ;;  %v302_v2 = vpop.xlane.xlu0 %301 }
 0x3b0   :  { %v326_v7 = vmul.f32 0.03125, %v302_v2  ;;  %v328_v8 = vmul.f32 0.03125, %v308_v1 }
 0x3b2   :  { %v334_v12 = vmul.f32 %v326_v7, %v326_v7  ;;  %v336_v18 = vmul.f32 %v328_v8, %v328_v8  ;;  %v346_v39 = vsub.f32 %v760_v44, %v326_v7  ;;  %v348_v56 = vsub.f32 %v762_v45, %v328_v8 }
 0x3b3   :  { %v305_v4 = vpop.xlane.xlu0 %304  ;;  %v299_v5 = vpop.xlane.xlu1 %298 }
 0x3b4   :  { %v325_v6 = vmul.f32 0.03125, %v299_v5  ;;  %v327_v9 = vmul.f32 0.03125, %v305_v4 }
 0x3b6   :  { %v333_v13 = vmul.f32 %v325_v6, %v325_v6  ;;  %v335_v19 = vmul.f32 %v327_v9, %v327_v9  ;;  %v345_v37 = vsub.f32 %v770_v49, %v325_v6  ;;  %v347_v48 = vsub.f32 %v764_v46, %v327_v9 }
 0x3b7   :  { %v315_v10 = vpop.xlane.xlu0 %314  ;;  %v318_v11 = vpop.xlane.xlu1 %317 }
 0x3b8   :  { %v329_v14 = vmul.f32 0.03125, %v315_v10  ;;  %v330_v15 = vmul.f32 0.03125, %v318_v11 }
 0x3ba   :  { %v337_v16 = vsub.f32 %v329_v14, %v333_v13  ;;  %v338_v17 = vsub.f32 %v330_v15, %v334_v12 }
 0x3bb   :  { %v321_v20 = vpop.xlane.xlu0 %320  ;;  %v324_v21 = vpop.xlane.xlu1 %323 }
 0x3bc   :  { %v341_v22 = vmax.f32 %v337_v16, 0.0  ;;  %v342_v23 = vmax.f32 %v338_v17, 0.0  ;;  %v331_v24 = vmul.f32 0.03125, %v321_v20  ;;  %v332_v25 = vmul.f32 0.03125, %v324_v21 }
 0x3be   :  { %v349_v26 = vadd.f32 1e-05, %v341_v22  ;;  %v350_v27 = vadd.f32 1e-05, %v342_v23  ;;  %v339_v28 = vsub.f32 %v331_v24, %v335_v19  ;;  %v340_v29 = vsub.f32 %v332_v25, %v336_v18 }
 0x3bf   :  { %v368_v30 = vpop.permute.xlu1 %367  ;;  %v683_v18 = vmov 3  }
 0x3c0   :  { %651 = vrsqrt.f32 %v349_v26  ;;  %v343_v31 = vmax.f32 %v339_v28, 0.0  ;;  %v344_v32 = vmax.f32 %v340_v29, 0.0 }
 0x3c1   :  { %653 = vrsqrt.f32 %v350_v27 }
 0x3c2   :  { %v351_v33 = vadd.f32 1e-05, %v343_v31  ;;  %v352_v34 = vadd.f32 1e-05, %v344_v32 }
 0x3c3   :  { %v373_v35 = vpop.permute.xlu1 %372  ;;  %v363_v40 = vpop.permute.xlu0 %362 }
 0x3c4   :  { %655 = vrsqrt.f32 %v351_v33 }
 0x3c5   :  { %657 = vrsqrt.f32 %v352_v34 }
 0x3c7   :  { %v378_v36 = vpop.permute.xlu1 %377 }
 0x3ca   :  { %v652_v38 = vpop.eup %651 }
 0x3cb   :  { %v654_v41 = vpop.eup %653  ;;  %v386_v42 = vpop.permute.xlu1 %385  ;;  %v357_v43 = vmul.f32 %v652_v38, %v345_v37 }
 0x3cc   :  { %v358_v47 = vmul.f32 %v654_v41, %v346_v39 }
 0x3cd   :  { %v380_v50 = vmul.f32 %v363_v40, %v357_v43 }
 0x3ce   :  { %v656_v51 = vpop.eup %655  ;;  %v381_v52 = vmul.f32 %v368_v30, %v358_v47 }
 0x3cf   :  { %v658_v53 = vpop.eup %657  ;;  %v359_v54 = vmul.f32 %v656_v51, %v347_v48  ;;  %v390_v55 = vpop.permute.xlu1 %389  ;;  %v400_v57 = vadd.f32 %v386_v42, %v380_v50 }
 0x3d0   :  { %v401_v49 = vadd.f32 %v390_v55, %v381_v52  ;;  %v360_v59 = vmul.f32 %v658_v53, %v348_v56 }
 0x3d1   :  { %v382_v58 = vmul.f32 %v373_v35, %v359_v54  ;;  %v817_v0 = vmax.f32 %v400_v57, 0.0 }
 0x3d2   :  { %v815_v44 = vmax.f32 %v401_v49, 0.0  ;;  %v383_v2 = vmul.f32 %v378_v36, %v360_v59 }
 0x3d3   :  { %v394_v63 = vpop.permute.xlu1 %393  ;;  %v420_v7 = vmul.f32 %v817_v0, %v817_v0  ;;  %v408_v13 = vsel %vm296_vm0, %v817_v0, 0.0 }
 0x3d4   :  { %v402_v1 = vadd.f32 %v394_v63, %v382_v58  ;;  %v411_v46 = vsel %vm296_vm0, %v815_v44, 0.0  ;;  %v421_v14 = vmul.f32 %v815_v44, %v815_v44 }
 0x3d5   :  { %412 = vadd.xlane.f32.xlu0 %v411_v46  ;;  %v424_v9 = vsel %vm296_vm0, %v420_v7, 0.0 }
 0x3d6   :  { %v821_v4 = vmax.f32 %v402_v1, 0.0  ;;  %v427_v15 = vsel %vm296_vm0, %v421_v14, 0.0 }
 0x3d7   :  { %v398_v5 = vpop.permute.xlu1 %397 }
 0x3d8   :  { %v403_v6 = vadd.f32 %v398_v5, %v383_v2  ;;  %v414_v45 = vsel %vm296_vm0, %v821_v4, 0.0  ;;  %v422_v11 = vmul.f32 %v821_v4, %v821_v4 }
 0x3d9   :  { %415 = vadd.xlane.f32.xlu0 %v414_v45 }
 0x3da   :  { %v827_v8 = vmax.f32 %v403_v6, 0.0  ;;  %v430_v12 = vsel %vm296_vm0, %v422_v11, 0.0 }
 0x3dc   :  { %v417_v10 = vsel %vm296_vm0, %v827_v8, 0.0  ;;  %v423_v16 = vmul.f32 %v827_v8, %v827_v8 }
 0x3dd   :  { %425 = vadd.xlane.f32.xlu0 %v424_v9  ;;  %418 = vadd.xlane.f32.xlu1 %v417_v10 }
 0x3de   :  { %v433_v17 = vsel %vm296_vm0, %v423_v16, 0.0 }
 0x3e1   :  { %431 = vadd.xlane.f32.xlu0 %v430_v12  ;;  %409 = vadd.xlane.f32.xlu1 %v408_v13 }
 0x3e5   :  { %428 = vadd.xlane.f32.xlu1 %v427_v15 }
 0x3e9   :  { %434 = vadd.xlane.f32.xlu1 %v433_v17 }
 0x3f7   :  { %473 = vperm.xlu0 %647, %v720_v3  }
 0x3fa   :  { %477 = vperm.xlu1 %648, %v791_v60  }
 0x3fb   :  { %650 = vset.pattern.permute.xlu0 %v683_v18 }
 0x3fe   :  { %481 = vperm.xlu1 %648, %v797_v61  }
 0x402   :  { %485 = vperm.xlu1 %648, %v803_v62  }
 0x406   :  { %649 = vset.pattern.permute.xlu1 %v683_v18 }
 0x407   :  { %493 = vperm.xlu1 %649, %v720_v3  }
 0x40b   :  { %497 = vperm.xlu1 %649, %v791_v60  }
 0x40f   :  { %501 = vperm.xlu1 %649, %v797_v61  }
 0x413   :  { %505 = vperm.xlu1 %649, %v803_v62  }
 0x462   :  { %v413_v19 = vpop.xlane.xlu0 %412 }
 0x463   :  { %v437_v26 = vmul.f32 0.03125, %v413_v19 }
 0x465   :  { %v445_v60 = vmul.f32 %v437_v26, %v437_v26  ;;  %v457_v57 = vsub.f32 %v815_v44, %v437_v26 }
 0x466   :  { %v416_v20 = vpop.xlane.xlu0 %415 }
 0x467   :  { %v438_v23 = vmul.f32 0.03125, %v416_v20 }
 0x469   :  { %v446_v27 = vmul.f32 %v438_v23, %v438_v23  ;;  %v458_v2 = vsub.f32 %v821_v4, %v438_v23 }
 0x46a   :  { %v426_v21 = vpop.xlane.xlu0 %425  ;;  %v419_v22 = vpop.xlane.xlu1 %418 }
 0x46b   :  { %v440_v30 = vmul.f32 0.03125, %v426_v21  ;;  %v439_v33 = vmul.f32 0.03125, %v419_v22 }
 0x46d   :  { %v447_v38 = vmul.f32 %v439_v33, %v439_v33 }
 0x46e   :  { %v432_v24 = vpop.xlane.xlu0 %431  ;;  %v410_v25 = vpop.xlane.xlu1 %409 }
 0x46f   :  { %v442_v28 = vmul.f32 0.03125, %v432_v24  ;;  %v436_v29 = vmul.f32 0.03125, %v410_v25 }
 0x471   :  { %v450_v31 = vsub.f32 %v442_v28, %v446_v27  ;;  %v444_v3 = vmul.f32 %v436_v29, %v436_v29  ;;  %v456_v53 = vsub.f32 %v817_v0, %v436_v29  ;;  %v459_v0 = vsub.f32 %v827_v8, %v439_v33 }
 0x472   :  { %v429_v32 = vpop.xlane.xlu1 %428 }
 0x473   :  { %v448_v61 = vsub.f32 %v440_v30, %v444_v3  ;;  %v441_v34 = vmul.f32 0.03125, %v429_v32  ;;  %v454_v62 = vmax.f32 %v450_v31, 0.0 }
 0x475   :  { %v452_v35 = vmax.f32 %v448_v61, 0.0  ;;  %v449_v36 = vsub.f32 %v441_v34, %v445_v60  ;;  %v462_v42 = vadd.f32 1e-05, %v454_v62 }
 0x476   :  { %v435_v37 = vpop.xlane.xlu1 %434  ;;  %v474_v56 = vpop.permute.xlu0 %473 }
 0x477   :  { %v460_v39 = vadd.f32 1e-05, %v452_v35  ;;  %v453_v40 = vmax.f32 %v449_v36, 0.0  ;;  %v443_v41 = vmul.f32 0.03125, %v435_v37 }
 0x479   :  { %659 = vrsqrt.f32 %v460_v39  ;;  %v461_v43 = vadd.f32 1e-05, %v453_v40  ;;  %v451_v47 = vsub.f32 %v443_v41, %v447_v38 }
 0x47a   :  { %v478_v48 = vpop.permute.xlu1 %477 }
 0x47b   :  { %661 = vrsqrt.f32 %v461_v43  ;;  %v455_v50 = vmax.f32 %v451_v47, 0.0 }
 0x47c   :  { %663 = vrsqrt.f32 %v462_v42 }
 0x47d   :  { %v463_v51 = vadd.f32 1e-05, %v455_v50 }
 0x47e   :  { %v482_v52 = vpop.permute.xlu1 %481 }
 0x47f   :  { %665 = vrsqrt.f32 %v463_v51 }
 0x482   :  { %v486_v54 = vpop.permute.xlu1 %485 }
 0x483   :  { %v660_v55 = vpop.eup %659 }
 0x484   :  { %v468_v49 = vmul.f32 %v660_v55, %v456_v53 }
 0x485   :  { %v662_v58 = vpop.eup %661 }
 0x486   :  { %v664_v59 = vpop.eup %663  ;;  %v469_v63 = vmul.f32 %v662_v58, %v457_v57  ;;  %v488_v1 = vmul.f32 %v474_v56, %v468_v49  ;;  %v494_v46 = vpop.permute.xlu1 %493 }
 0x487   :  { %v470_v45 = vmul.f32 %v664_v59, %v458_v2 }
 0x488   :  { %v489_v5 = vmul.f32 %v478_v48, %v469_v63  ;;  %v508_v6 = vadd.f32 %v494_v46, %v488_v1 }
 0x489   :  { %v666_v7 = vpop.eup %665  ;;  %v490_v44 = vmul.f32 %v482_v52, %v470_v45 }
 0x48a   :  { %v512_v9 = vmax.f32 %v508_v6, 0.0  ;;  %v498_v10 = vpop.permute.xlu1 %497  ;;  %v471_v12 = vmul.f32 %v666_v7, %v459_v0 }
 0x48b   :  { %v509_v11 = vadd.f32 %v498_v10, %v489_v5 }
 0x48c   :  { %516 = vst.msk [vmem:[%s875_s4] sm:$0xff] %vm296_vm0, %v512_v9  ;;  %v491_v15 = vmul.f32 %v486_v54, %v471_v12 }
 0x48d   :  { %v513_v13 = vmax.f32 %v509_v11, 0.0 }
 0x48e   :  { %v502_v14 = vpop.permute.xlu1 %501 }
 0x48f   :  { %517 = vst.msk [vmem:[%s875_s4 + $0x8] sm:$0xff] %vm296_vm0, %v513_v13  ;;  %v510_v4 = vadd.f32 %v502_v14, %v490_v44 }
 0x491   :  { %v514_v16 = vmax.f32 %v510_v4, 0.0 }
 0x492   :  { %v506_v17 = vpop.permute.xlu1 %505 }
 0x493   :  { %518 = vst.msk [vmem:[%s875_s4 + $0x10] sm:$0xff] %vm296_vm0, %v514_v16  ;;  %v511_v8 = vadd.f32 %v506_v17, %v491_v15 }
 0x495   :  { %v515_v18 = vmax.f32 %v511_v8, 0.0 }
 0x497   :  { %519 = vst.msk [vmem:[%s875_s4 + $0x18] sm:$0xff] %vm296_vm0, %v515_v18 }

</bundles_post_ra>
